<compile_context>
chip_gen: v7x
topology: tpu7x:2x2x1
jax: 0.10.0
libtpu: 0.0.40
codegen_flags: <defaults>
</compile_context>

<pallas_src>
import functools

import jax
import jax.numpy as jnp
from jax.experimental import pallas as pl
from jax.experimental.pallas import tpu as pltpu

_LANE = 128
_SUBLANE = 8


def _round_up(x, m):
    return (x + m - 1) // m * m


def _top_kernel(x_ref, w_ref, b_ref, o_ref):
    """One batch tile of: softmax(x @ w + b, axis=-1).

    x_ref: [TB, F]      f32 activation tile (cast to bf16 on the VPU here)
    w_ref: [F, O_pad]   bf16 weight (VMEM resident, single-buffered)
    b_ref: [1, O_pad]   f32 bias; padded lanes are -inf (softmax mask)
    o_ref: [TB, O_pad]  probabilities (lane-dense; padded lanes -> 0)
    """
    x_bf16 = x_ref[...].astype(jnp.bfloat16)          # free VPU cast in VMEM
    logits = jnp.dot(
        x_bf16, w_ref[...], preferred_element_type=jnp.float32
    ) + b_ref[...]
    # Numerically stable softmax in f32; padded lanes are -inf -> exp() == 0.
    m = jnp.max(logits, axis=-1, keepdims=True)
    e = jnp.exp(logits - m)
    denom = jnp.sum(e, axis=-1, keepdims=True)
    # Exact reciprocal (approx=True has only ~bf16 accuracy and breaks the
    # "rows sum to 1" guarantee at the 1e-3 level).
    o_ref[...] = (e * pl.reciprocal(denom)).astype(o_ref.dtype)


def prepare_inception_top_params(weight, bias):
    """One-time parameter prep — keep OUT of the per-call hot path.

    weight: [O, F] (PyTorch Linear layout), bias: [O]
    Returns (w_t_pad [F, O_pad] bf16, b_pad [1, O_pad] f32 with -inf padding).
    """
    O, F = weight.shape
    O_pad = _round_up(O, _LANE)
    w_t = jnp.transpose(weight)                              # [F, O], done once
    w_t = jnp.pad(w_t, ((0, 0), (0, O_pad - O)))             # zero padded classes
    w_t = w_t.astype(jnp.bfloat16)
    b_pad = jnp.full((1, O_pad), -jnp.inf, dtype=jnp.float32)
    b_pad = b_pad.at[0, :O].set(bias.astype(jnp.float32))    # -inf masks padding
    return w_t, b_pad


def inception_top_forward(x_nchw, w_t_pad, b_pad, num_classes, *,
                          tb=256, out_dtype=jnp.float32):
    """Flatten(1) -> Linear -> Softmax(dim=-1) with prepared params.

    tb: batch tile; use 256 on v6e/v7x (2x256x256 MXU), 128 on v5e.
    out_dtype: jnp.bfloat16 halves output writeback if downstream tolerates it.
    """
    B = x_nchw.shape[0]
    x_flat = x_nchw.reshape(B, -1)                    # Flatten(1); metadata only
    F, O_pad = w_t_pad.shape
    assert x_flat.shape[1] == F, (x_flat.shape, w_t_pad.shape)

    # Batch tile: multiple of 8 sublanes, capped at `tb`. No batch padding —
    # the last grid step may be ragged; softmax is per-row and the partial
    # output block write is masked, so garbage rows are never observable.
    TB = min(tb, _round_up(B, _SUBLANE))
    grid = (pl.cdiv(B, TB),)

    # VMEM budget: double-buffered x/out tiles + single-buffered weight/bias
    # + slack for the f32 softmax intermediates; clamp to a ceiling that is
    # safe on every chip (<= 32 MiB, well under v7x's 64 MiB/TC).
    out_itemsize = jnp.dtype(out_dtype).itemsize
    vmem_bytes = (2 * TB * F * 4                     # x tiles (f32, 2 buffers)
                  + 2 * TB * O_pad * out_itemsize    # out tiles (2 buffers)
                  + F * O_pad * 2                    # bf16 weight (1 buffer)
                  + O_pad * 4                        # bias
                  + 4 * TB * O_pad * 4               # logits/exp intermediates
                  + (1 << 20))                       # slack
    vmem_bytes = max(min(vmem_bytes, 32 << 20), 4 << 20)

    cost = pl.CostEstimate(
        flops=2 * B * F * O_pad,
        transcendentals=B * O_pad,
        bytes_accessed=(x_flat.size * 4 + w_t_pad.size * 2 + b_pad.size * 4
                        + B * O_pad * out_itemsize),
    )

    out = pl.pallas_call(
        _top_kernel,
        out_shape=jax.ShapeDtypeStruct((B, O_pad), out_dtype),
        grid=grid,
        in_specs=[
            # Activation tile, double-buffered by default.
            pl.BlockSpec((TB, F), lambda i: (i, 0)),
            # Weight & bias are VMEM-resident across the whole grid (constant
            # index_map) -> single buffer saves half the weight VMEM.
            pl.BlockSpec((F, O_pad), lambda i: (0, 0),
                         pipeline_mode=pl.Buffered(1)),
            pl.BlockSpec((1, O_pad), lambda i: (0, 0),
                         pipeline_mode=pl.Buffered(1)),
        ],
        out_specs=pl.BlockSpec((TB, O_pad), lambda i: (i, 0)),
        compiler_params=pltpu.CompilerParams(
            dimension_semantics=("parallel",),
            vmem_limit_bytes=vmem_bytes,
        ),
        cost_estimate=cost,
    )(x_flat, w_t_pad, b_pad)

    # Drop the lane-padded (masked) class columns; batch dim is already exact.
    return out[:, :num_classes]


if __name__ == "__main__":
    key = jax.random.PRNGKey(0)
    k_x, k_w, k_b = jax.random.split(key, 3)

    # Small shapes consistent with the module head: avgpool output [B, C, 1, 1],
    # Linear(C -> num_classes), Softmax(dim=-1).
    B, C, H, W = 2, 32, 1, 1
    NUM_CLASSES = 8

    x = jax.random.normal(k_x, (B, C, H, W), dtype=jnp.float32)
    weight = jax.random.normal(k_w, (NUM_CLASSES, C), dtype=jnp.float32) * 0.05
    bias = jax.random.normal(k_b, (NUM_CLASSES,), dtype=jnp.float32) * 0.01

    # One-time prep (transpose + pad + bf16), outside the hot path.
    w_prep, b_prep = prepare_inception_top_params(weight, bias)

    fwd = jax.jit(
        functools.partial(inception_top_forward, num_classes=NUM_CLASSES)
    )
    probs = jax.block_until_ready(fwd(x, w_prep, b_prep))

    # Reference in plain JAX, matching the kernel's bf16 matmul inputs.
    x_flat = x.reshape(B, -1)
    ref_logits = (
        x_flat.astype(jnp.bfloat16).astype(jnp.float32)
        @ weight.astype(jnp.bfloat16).astype(jnp.float32).T
        + bias
    )
    ref = jax.nn.softmax(ref_logits, axis=-1)

    assert probs.shape == (B, NUM_CLASSES)
    assert bool(jnp.all(jnp.isfinite(probs))), "non-finite probabilities"
    assert jnp.allclose(probs, ref, atol=2e-3, rtol=2e-3), "mismatch vs reference"
    assert jnp.allclose(jnp.sum(probs, axis=-1), 1.0, atol=2e-3)

    print("KERNEL_OK")
</pallas_src>

<mosaic_0001>
module attributes {stable_mosaic.version = 11 : i64} {
  func.func @_top_kernel(%arg0: i32, %arg1: memref<8x32xf32, #tpu.memory_space<vmem>>, %arg2: memref<32x128xbf16, #tpu.memory_space<vmem>>, %arg3: memref<1x128xf32, #tpu.memory_space<vmem>>, %arg4: memref<8x128xf32, #tpu.memory_space<vmem>>) attributes {dimension_semantics = [#tpu.dimension_semantics<parallel>], iteration_bounds = array<i64: 1>, scalar_prefetch = 0 : i64, scratch_operands = 0 : i64, tpu.core_type = #tpu.core_type<tc>, window_params = [{transform_indices = @transform_0, window_bounds = array<i64: 8, 32>}, {pipeline_mode = #tpu.pipeline_mode<synchronous>, transform_indices = @transform_1, window_bounds = array<i64: 32, 128>}, {pipeline_mode = #tpu.pipeline_mode<synchronous>, transform_indices = @transform_2, window_bounds = array<i64: 1, 128>}, {transform_indices = @transform_3, window_bounds = array<i64: 8, 128>}]} {
    %c0 = arith.constant 0 : index
    %c0_0 = arith.constant 0 : index
    %0 = vector.load %arg1[%c0, %c0_0] : memref<8x32xf32, #tpu.memory_space<vmem>>, vector<8x32xf32>
    %1 = arith.truncf %0 : vector<8x32xf32> to vector<8x32xbf16>
    %c0_1 = arith.constant 0 : index
    %c0_2 = arith.constant 0 : index
    %2 = vector.load %arg2[%c0_1, %c0_2] : memref<32x128xbf16, #tpu.memory_space<vmem>>, vector<32x128xbf16>
    %cst = arith.constant dense<0.000000e+00> : vector<8x128xf32>
    %3 = tpu.matmul %1, %2, %cst {dimension_numbers = #tpu.dot_dimension_numbers<[1], [0], [0], [1], [0, 0, 1, 1], [], []>} : vector<8x32xbf16>, vector<32x128xbf16>, vector<8x128xf32> -> vector<8x128xf32>
    %c0_3 = arith.constant 0 : index
    %c0_4 = arith.constant 0 : index
    %4 = vector.load %arg3[%c0_3, %c0_4] : memref<1x128xf32, #tpu.memory_space<vmem>>, vector<1x128xf32>
    %5 = vector.broadcast %4 : vector<1x128xf32> to vector<8x128xf32>
    %6 = arith.addf %3, %5 : vector<8x128xf32>
    %cst_5 = arith.constant dense<0xFF800000> : vector<8xf32>
    %7 = vector.multi_reduction <maximumf>, %6, %cst_5 [1] : vector<8x128xf32> to vector<8xf32>
    %8 = vector.shape_cast %7 : vector<8xf32> to vector<8x1xf32>
    %9 = vector.broadcast %8 : vector<8x1xf32> to vector<8x128xf32>
    %10 = arith.subf %6, %9 : vector<8x128xf32>
    %11 = math.exp %10 : vector<8x128xf32>
    %cst_6 = arith.constant dense<0.000000e+00> : vector<8xf32>
    %12 = vector.multi_reduction <add>, %11, %cst_6 [1] : vector<8x128xf32> to vector<8xf32>
    %13 = vector.shape_cast %12 : vector<8xf32> to vector<8x1xf32>
    %14 = tpu.reciprocal %13 : vector<8x1xf32> -> vector<8x1xf32>
    %15 = vector.broadcast %14 : vector<8x1xf32> to vector<8x128xf32>
    %16 = arith.mulf %11, %15 : vector<8x128xf32>
    %c0_7 = arith.constant 0 : index
    %c0_8 = arith.constant 0 : index
    %17 = vector.load %arg4[%c0_7, %c0_8] : memref<8x128xf32, #tpu.memory_space<vmem>>, vector<8x128xf32>
    tpu.vector_store %arg4[%c0_7, %c0_8], %16 {strides = array<i32>} : memref<8x128xf32, #tpu.memory_space<vmem>>, vector<8x128xf32>,
    return
  }
  func.func @transform_0(%arg0: i32) -> (i32, i32) {
    %c0_i32 = arith.constant 0 : i32
    %c0_i32_0 = arith.constant 0 : i32
    return %arg0, %c0_i32 : i32, i32
  }
  func.func @transform_1(%arg0: i32) -> (i32, i32) {
    %c0_i32 = arith.constant 0 : i32
    %c0_i32_0 = arith.constant 0 : i32
    %c0_i32_1 = arith.constant 0 : i32
    return %c0_i32, %c0_i32_0 : i32, i32
  }
  func.func @transform_2(%arg0: i32) -> (i32, i32) {
    %c0_i32 = arith.constant 0 : i32
    %c0_i32_0 = arith.constant 0 : i32
    %c0_i32_1 = arith.constant 0 : i32
    return %c0_i32, %c0_i32_0 : i32, i32
  }
  func.func @transform_3(%arg0: i32) -> (i32, i32) {
    %c0_i32 = arith.constant 0 : i32
    %c0_i32_0 = arith.constant 0 : i32
    return %arg0, %c0_i32 : i32, i32
  }
}

</mosaic_0001>

<bundles_post_ra>
// kernel: inception_top_forward.1
= control target key start
LH: loop header
LB: loop body
LE: loop exit
PB: predicated region body
PF: predicated region fallthrough
CT: control target
= control target key end

     0   :  { %8 = vsyncpa [#allocation3], 0  ;;  %s261_s0 = inlined_call_operand.vmem [shape: f32[2,32], index: 0, kind: input, shape index: {}]   ;;  %s262_s1 = inlined_call_operand.hbm [shape: bf16[32,128], index: 1, kind: input, shape index: {}]   ;;  %s263_s2 = inlined_call_operand.vmem [shape: f32[1,128], index: 2, kind: input, shape index: {}]   ;;  %s264_s3 = inlined_call_operand.hbm [shape: f32[2,128], index: 3, kind: output, shape index: {}]  }
   0x1   :  { %9 = vsyncpa [#allocation4], 0  ;;  %s203_s12 = smov [#allocation2]   ;;  %s155_s16 = scalar_lea.hbm %s262_s1, 256 }
   0x2   :  { %s17_s13 = sshll.u32 %s203_s12, 4  ;;  %p156_p0 = scmp.ne.s32.totalorder %s262_s1, %s155_s16  ;;  %s18_s13 = int_to_ptr.vmem [resolvable:$true] %s17_s13 }
   0x3   :  { %p159_p1 = scmp.lt.u32.totalorder %s155_s16, %s262_s1 }
   0x5   :  { %p161_p2 = pnand %p159_p1, %p156_p0 }
   0x7   :  { %164 = shalt.err (!%p161_p2)
}
   0x8   :  { %s165_s21 = scalar_lea.vmem %s18_s13, 256  ;;  %p170_p4 = scmp.lt.s32.totalorder %s18_s13, %s18_s13 }
   0x9   :  { %p166_p3 = scmp.ne.s32.totalorder %s18_s13, %s165_s21  ;;  %p171_p5 = scmp.lt.s32.totalorder %s165_s21, %s165_s21 }
   0xb   :  { %p172_p6 = por %p171_p5, %p170_p4 }
   0xd   :  { %p173_p7 = pnand %p172_p6, %p166_p3 }
   0xf   :  { %176 = shalt.err (!%p173_p7)
}
  0x10   :  { %s204_s22 = smov 64   ;;  %s205_s23 = smov 4  }
  0x11   :  { %23 = dma.hbm_to_vmem [thread:$0]  %s262_s1, 256, %s18_s13, [#allocation3], %s204_s22, %s204_s22, %s205_s23  }
  0x12   :  { %199 = dma.done.wait [#allocation3], 256  }
  0x13   :  { %200 = vsyncadd [#allocation3], 4294967040  ;;  %v206_v0 = vmov 0.0   ;;  %vm207_vm0 = vmmov 0   ;;  %v149_v1 = vld [vmem:[#allocation2] sm:$0xff]   ;;  %v150_v2 = vld [vmem:[#allocation2 + $0x8] sm:$0xff]  }
  0x14   :  { %133 = vmatprep.subr.bf16.mxu0 %v206_v0  ;;  %137 = vmatprep.mubr.msk.bf16.mxu0 %vm207_vm0, %v206_v0  ;;  %v30_v3 = vld [vmem:[%s261_s0] sm:$0xff]  ;;  %vm55_vm1 = vcmask 261120  }
  0x15   :  { %134 = vmatpush3.bf16.msra.mxu0 %v149_v1  ;;  %v31_v4 = vpack.c.bf16 %v30_v3, %v30_v3  ;;  %v126_v5 = vld [vmem:[%s263_s2] ss:$0 sm:$0xff] }
  0x16   :  { %135 = vmatprep.subr.bf16.mxu0 %v206_v0 }
  0x19   :  { %136 = vmatpush3.bf16.msra.mxu0 %v150_v2 }
  0x1c   :  { %138 = vmatmul.mubr.msk.bf16.vlgmr.msra.gmra.mrb[0].mxu0 %vm55_vm1, %v31_v4 }
  0xef   :  { %v93_v6 = vpop.f32.mrb[0].mxu0 }
  0xf0   :  { %v94_v7 = vadd.f32 %v126_v5, %v93_v6  ;;  %v139_v8 = vpop.f32.mrb[1].mxu0 }
  0xf1   :  { %v96_v9 = vpop.f32.mrb[2].mxu0 }
  0xf2   :  { %99 = vmax.xlane.f32.xlu0 %v94_v7  ;;  %v140_v10 = vpop.f32.mrb[3].mxu0 }
 0x17f   :  { %v100_v11 = vpop.xlane.xlu0 %99 }
 0x180   :  { %v101_v12 = vsub.f32 %v94_v7, %v100_v11 }
 0x182   :  { %v102_v13 = vmul.f32 1.442695, %v101_v12 }
 0x184   :  { %151 = vpow2.f32 %v102_v13 }
 0x18e   :  { %v152_v14 = vpop.eup %151 }
 0x18f   :  { %104 = vadd.xlane.f32.xlu0 %v152_v14 }
 0x21c   :  { %v105_v15 = vpop.xlane.xlu0 %104 }
 0x21d   :  { %153 = vrcp.f32 %v105_v15 }
 0x227   :  { %v154_v16 = vpop.eup %153 }
 0x228   :  { %v107_v17 = vmul.f32 %v154_v16, %v152_v14 }
 0x22a   :  { %108 = vst [vmem:[#allocation5] sm:$0xff] %v107_v17 }
 0x22b   :  { %113 = vsyncadd [#allocation4], 96  ;;  %s208_s0 = smov [#allocation5]  }
 0x22c   :  { %s114_s2 = sshll.u32 %s208_s0, 4  ;;  %s115_s2 = int_to_ptr.vmem [resolvable:$true] %s114_s2 }
 0x22d   :  { %s177_s29 = scalar_lea.vmem %s115_s2, 32  ;;  %s181_s30 = scalar_lea.vmem %s115_s2, 128 }
 0x22e   :  { %p178_p8 = scmp.ne.s32.totalorder %s115_s2, %s177_s29  ;;  %p182_p9 = scmp.lt.s32.totalorder %s115_s2, %s115_s2 }
 0x22f   :  { %p183_p10 = scmp.lt.s32.totalorder %s181_s30, %s177_s29 }
 0x231   :  { %p184_p11 = por %p183_p10, %p182_p9 }
 0x233   :  { %p185_p12 = pnand %p184_p11, %p178_p8 }
 0x235   :  { %188 = shalt.err (!%p185_p12)
}
 0x236   :  { %s189_s6 = scalar_lea.hbm %s264_s3, 32 }
 0x237   :  { %p190_p13 = scmp.ne.s32.totalorder %s264_s3, %s189_s6  ;;  %p193_p0 = scmp.lt.u32.totalorder %s189_s6, %s264_s3 }
 0x239   :  { %p195_p1 = pnand %p193_p0, %p190_p13 }
 0x23b   :  { %198 = shalt.err (!%p195_p1)
}
 0x23c   :  { %s209_s11 = smov 32   ;;  %s210_s12 = smov 2  }
 0x23d   :  { %120 = dma.vmem_to_hbm [thread:$0]  %s115_s2, 32, %s264_s3, [#allocation4], %s209_s11, %s209_s11, %s210_s12  }
 0x23e   :  { %201 = dma.done.wait [#allocation4], 128  }
 0x23f   :  { %202 = vsyncadd [#allocation4], 4294967168 }
 0x240   :  { %124 = vsyncpa [#allocation3], 1 }
 0x241   :  { %125 = vsyncpa [#allocation4], 1 }

</bundles_post_ra>
